<compile_context>
chip_gen: v5e
topology: v5e:2x2
jax: 0.10.0
libtpu: 0.0.40
codegen_flags: <defaults>
</compile_context>

<pallas_src>
import functools
import math

import jax
import jax.numpy as jnp
from jax.experimental import pallas as pl
from jax.experimental.pallas import tpu as pltpu


# ----------------------------------------------------------------------------
# numerically stable elementwise helpers
# ----------------------------------------------------------------------------
def _sigmoid(x):
    e = jnp.exp(-jnp.abs(x))                 # exp of a non-positive number only
    return jnp.where(x >= 0, 1.0 / (1.0 + e), e / (1.0 + e))


def _silu(x):
    return x * _sigmoid(x)


def _softplus(x):
    return jnp.maximum(x, 0.0) + jnp.log(1.0 + jnp.exp(-jnp.abs(x)))


def _round_up(n, m):
    return ((n + m - 1) // m) * m


@functools.lru_cache(maxsize=1)
def _vmem_limit():
    # Explicit scoped-VMEM budget (review): physical minus headroom, capped so
    # it is safe on v5e/v6e (128 MiB) and v7x (64 MiB).
    try:
        cap = int(pltpu.get_tpu_info().vmem_capacity_bytes)
        return max(min(cap - (16 << 20), 96 << 20), 16 << 20)
    except Exception:
        return 32 << 20


# ----------------------------------------------------------------------------
# batch-folded rowwise matmul: (M, K) @ (K, N), M = B*L rows on the MXU M axis
# ----------------------------------------------------------------------------
def _rowwise_matmul(x, w_bf16, bias=None, act=None, *, tm=256, tn_max=512):
    M, K = x.shape
    N = w_bf16.shape[1]
    TM = min(tm, _round_up(M, 8))
    Mp = _round_up(M, TM)
    if Mp != M:
        x = jnp.pad(x, ((0, Mp - M), (0, 0)))
    TN = tn_max if (N > 1024 and N % tn_max == 0) else N
    has_bias = bias is not None

    def kern(x_ref, w_ref, *rest):
        if has_bias:
            b_ref, o_ref = rest
        else:
            (o_ref,) = rest
        acc = jnp.dot(x_ref[...].astype(jnp.bfloat16), w_ref[...],
                      preferred_element_type=jnp.float32)
        if has_bias:
            acc = acc + b_ref[...]
        if act is not None:
            acc = act(acc)
        o_ref[...] = acc

    in_specs = [pl.BlockSpec((TM, K), lambda i, j: (i, 0)),
                pl.BlockSpec((K, TN), lambda i, j: (0, j))]
    operands = [x, w_bf16]
    if has_bias:
        in_specs.append(pl.BlockSpec((1, TN), lambda i, j: (0, j)))
        operands.append(bias)

    out = pl.pallas_call(
        kern,
        out_shape=jax.ShapeDtypeStruct((Mp, N), jnp.float32),
        grid_spec=pltpu.PrefetchScalarGridSpec(
            num_scalar_prefetch=0,
            grid=(Mp // TM, N // TN),
            in_specs=in_specs,
            out_specs=pl.BlockSpec((TM, TN), lambda i, j: (i, j)),
        ),
        compiler_params=pltpu.CompilerParams(
            dimension_semantics=("parallel", "parallel"),
            vmem_limit_bytes=_vmem_limit()),
    )(*operands)
    return out[:M] if Mp != M else out


# ----------------------------------------------------------------------------
# Embedding: Conv1d(k=3, 'same', bias=False) + BN(eval) + SiLU as one im2col
# matmul over B*L rows (BN folded into the weight / bias).
# ----------------------------------------------------------------------------
def embed(x_ncl, w, gamma, beta, mean, var, eps=1e-5):
    B, C_in, L = x_ncl.shape
    D = w.shape[2]
    x_blc = jnp.transpose(x_ncl, (0, 2, 1))                    # (B, L, C_in)
    xpad = jnp.pad(x_blc, ((0, 0), (1, 1), (0, 0)))            # 'same' pad, k=3
    cols = jnp.concatenate([xpad[:, k:k + L, :] for k in range(3)], axis=-1)
    rows = cols.reshape(B * L, 3 * C_in)                       # im2col, B in M

    scale = gamma * jax.lax.rsqrt(var + eps)                   # (1, D)
    w_eff = (w.reshape(3 * C_in, D) * scale).astype(jnp.bfloat16)
    b_eff = beta - mean * scale
    out = _rowwise_matmul(rows, w_eff, bias=b_eff, act=_silu)
    return out.reshape(B, L, D)


# ----------------------------------------------------------------------------
# Per-batch Mamba inner kernel: causal conv + SSM params + selective scan +
# gating.  Sequence layout inside the kernel: (L, d_inner), d_inner on lanes.
# ----------------------------------------------------------------------------
def mamba_inner_kernel(xc_ref, res_ref, convw_ref, convb_ref,
                       wdtin_ref, wbc_ref, wdt_ref, bdt_ref,
                       at_ref, dskip_ref,
                       y_ref,
                       u_scr, dl_scr, bc_scr, st_scr,
                       *, d_state, d_conv, dt_rank, chunk):
    L, d_inner = xc_ref.shape
    xc = xc_ref[...]                                           # (L, d_inner)

    # causal depthwise conv (left pad d_conv-1) + bias + SiLU.
    # tap k reads x[l - (d_conv-1) + k]; the shift runs on the XLU (roll) and
    # the first `s` wrapped rows are masked to zero.
    row = jax.lax.broadcasted_iota(jnp.int32, (L, d_inner), 0)
    conv = xc * convw_ref[d_conv - 1:d_conv, :]
    for k in range(d_conv - 1):
        s = d_conv - 1 - k
        shifted = pltpu.roll(xc, shift=s, axis=0)
        shifted = jnp.where(row < s, 0.0, shifted)
        conv = conv + shifted * convw_ref[k:k + 1, :]
    u = _silu(conv + convb_ref[...])                           # (L, d_inner)
    u_scr[...] = u

    # input-dependent SSM parameters
    u16 = u.astype(jnp.bfloat16)
    # fused B|C projection: one bf16 MXU dot -> (L, 2*d_state) scratch
    bc_scr[...] = jnp.dot(u16, wbc_ref[...], preferred_element_type=jnp.float32)
    dtr = jnp.dot(u, wdtin_ref[...], preferred_element_type=jnp.float32)
    if dt_rank <= 8:
        # low-rank dt: broadcast-FMA on the VPU instead of a K=dt_rank MXU dot
        dpre = jnp.sum(dtr[:, :, None] * wdt_ref[...][None, :, :], axis=1)
    else:
        dpre = jnp.dot(dtr, wdt_ref[...], preferred_element_type=jnp.float32)
    dl_scr[...] = _softplus(dpre + bdt_ref[...])               # delta (L, di)

    st_scr[...] = jnp.zeros(st_scr.shape, st_scr.dtype)
    a_t = at_ref[...]                                          # (ds, di)
    dsk = dskip_ref[...]                                       # (1, di)

    # chunked selective scan; state (d_state, d_inner), d_inner on lanes.
    @pl.loop(0, L // chunk)
    def _(c):
        off = pl.multiple_of(c * chunk, chunk)
        dl = dl_scr[pl.ds(off, chunk), :]                      # (T, di)
        uu = u_scr[pl.ds(off, chunk), :]                       # (T, di)
        bc = bc_scr[pl.ds(off, chunk), :]                      # (T, 2*ds)
        rs = res_ref[pl.ds(off, chunk), :]                     # (T, di)

        st = st_scr[...]                                       # (ds, di)
        y_rows = []
        for t in range(chunk):                                 # static unroll
            dl_t = dl[t:t + 1, :]                              # (1, di)
            du_t = dl_t * uu[t:t + 1, :]                       # delta*u (1, di)
            dA_t = jnp.exp(dl_t * a_t)                         # (ds, di)  EUP
            b_t = bc[t:t + 1, 0:d_state]                       # (1, ds)
            c_t = bc[t:t + 1, d_state:2 * d_state]             # (1, ds)
            dBu_t = (b_t[:, :, None] * du_t[:, None, :])[0]    # (ds, di)
            st = dA_t * st + dBu_t
            y_rows.append(jnp.sum(st[None, :, :] * c_t[:, :, None], axis=1))
        st_scr[...] = st

        yk = jnp.concatenate(y_rows, axis=0)                   # (T, di)
        yk = (yk + uu * dsk) * _silu(rs)                       # D skip + gate
        y_ref[pl.ds(off, chunk), :] = yk                       # blocked store


def mamba_layer(h, p, *, d_state, d_conv, dt_rank):
    B, L, d_model = h.shape
    d_inner = p["w_in"].shape[1] // 2
    chunk = 8
    Lp = _round_up(L, chunk)                    # keep chunk=8 / aligned stores

    # 1) batch-folded input projection; split x / z in the wrapper.
    xz = _rowwise_matmul(h.reshape(B * L, d_model),
                         p["w_in"].astype(jnp.bfloat16))        # (B*L, 2*di)
    xc = xz[:, :d_inner].reshape(B, L, d_inner)
    res = xz[:, d_inner:].reshape(B, L, d_inner)
    if Lp != L:
        pad = ((0, 0), (0, Lp - L), (0, 0))
        xc, res = jnp.pad(xc, pad), jnp.pad(res, pad)

    # weights pre-arranged outside the kernel
    w_dt_in = p["w_x"][:, :dt_rank]                             # f32 (di, r)
    w_bc = p["w_x"][:, dt_rank:].astype(jnp.bfloat16)           # fused B|C
    a_t = (-jnp.exp(p["a_log"])).T                              # (ds, di) f32

    kernel = functools.partial(mamba_inner_kernel, d_state=d_state,
                               d_conv=d_conv, dt_rank=dt_rank, chunk=chunk)

    def _full(a):
        n = a.ndim
        return pl.BlockSpec(a.shape, lambda b, n=n: (0,) * n)

    seq_spec = pl.BlockSpec((None, Lp, d_inner), lambda b: (b, 0, 0))

    # 2) per-batch conv + selective scan + gating kernel.
    yg = pl.pallas_call(
        kernel,
        out_shape=jax.ShapeDtypeStruct((B, Lp, d_inner), jnp.float32),
        grid_spec=pltpu.PrefetchScalarGridSpec(
            num_scalar_prefetch=0,
            grid=(B,),
            in_specs=[
                seq_spec, seq_spec,
                _full(p["conv_w"]), _full(p["conv_b"]),
                _full(w_dt_in), _full(w_bc),
                _full(p["w_dt"]), _full(p["b_dt"]),
                _full(a_t), _full(p["d"]),
            ],
            out_specs=seq_spec,
            scratch_shapes=[
                pltpu.VMEM((Lp, d_inner), jnp.float32),          # u
                pltpu.VMEM((Lp, d_inner), jnp.float32),          # delta
                pltpu.VMEM((Lp, 2 * d_state), jnp.float32),      # B | C
                pltpu.VMEM((d_state, d_inner), jnp.float32),     # scan state
            ],
        ),
        compiler_params=pltpu.CompilerParams(
            dimension_semantics=("parallel",),
            vmem_limit_bytes=_vmem_limit()),
    )(xc, res, p["conv_w"], p["conv_b"], w_dt_in, w_bc,
      p["w_dt"], p["b_dt"], a_t, p["d"])

    # 3) batch-folded output projection.
    out = _rowwise_matmul(yg[:, :L].reshape(B * L, d_inner),
                          p["w_out"].astype(jnp.bfloat16))
    return out.reshape(B, L, d_model)


# ----------------------------------------------------------------------------
# full forward (mirrors MambaSeq2Seq.forward; `y` is accepted but unused)
# ----------------------------------------------------------------------------
def mamba_seq2seq_forward(x, y, emb_params, layer_params, *, d_state, d_conv,
                          dt_rank):
    del y  # unused in the PyTorch module as well
    if x.ndim == 2:
        x = x[:, None, :]
    if x.ndim == 3 and x.shape[-1] == 1:
        x = jnp.transpose(x, (0, 2, 1))
    h = embed(x, *emb_params)                         # (B, L, d_model)
    for p in layer_params:
        h = mamba_layer(h, p, d_state=d_state, d_conv=d_conv, dt_rank=dt_rank)
    return jnp.sum(h, axis=-1)                        # (B, L)


# ----------------------------------------------------------------------------
# pure-JAX f32 reference (same math; fused weights) for a numerical check
# ----------------------------------------------------------------------------
def _ref_mamba(x, p, d_state, d_conv, dt_rank):
    B, L, _ = x.shape
    d_inner = p["w_in"].shape[1] // 2
    xz = x @ p["w_in"]
    xc, res = xz[..., :d_inner], xz[..., d_inner:]
    xp = jnp.pad(xc, ((0, 0), (d_conv - 1, 0), (0, 0)))
    conv = jnp.zeros_like(xc)
    for k in range(d_conv):
        conv = conv + xp[:, k:k + L, :] * p["conv_w"][k]
    conv = conv + p["conv_b"]
    u = _silu(conv)
    x_dbl = u @ p["w_x"]
    dt = x_dbl[..., :dt_rank]
    Bm = x_dbl[..., dt_rank:dt_rank + d_state]
    Cm = x_dbl[..., dt_rank + d_state:]
    delta = _softplus(dt @ p["w_dt"] + p["b_dt"])
    A = -jnp.exp(p["a_log"])
    dA = jnp.exp(delta[..., None] * A)                       # (B,L,di,ds)
    dBu = (delta * u)[..., None] * Bm[:, :, None, :]

    def step(state, inp):
        dA_l, dBu_l, C_l = inp
        state = dA_l * state + dBu_l
        return state, jnp.sum(state * C_l[:, None, :], axis=-1)

    state0 = jnp.zeros((B, d_inner, d_state), jnp.float32)
    _, ys = jax.lax.scan(step, state0, (dA.transpose(1, 0, 2, 3),
                                        dBu.transpose(1, 0, 2, 3),
                                        Cm.transpose(1, 0, 2)))
    yv = ys.transpose(1, 0, 2) + u * p["d"]
    yv = yv * _silu(res)
    return yv @ p["w_out"]


def _ref_forward(x, emb_params, layer_params, d_state, d_conv, dt_rank):
    w, gamma, beta, mean, var = emb_params
    xb = jnp.transpose(x, (0, 2, 1))
    xpad = jnp.pad(xb, ((0, 0), (1, 1), (0, 0)))
    B, L, _ = xb.shape
    D = w.shape[2]
    h = jnp.zeros((B, L, D), jnp.float32)
    for k in range(3):
        h = h + jnp.einsum("blc,cd->bld", xpad[:, k:k + L, :], w[k])
    h = (h - mean) * jax.lax.rsqrt(var + 1e-5) * gamma + beta
    h = _silu(h)
    for p in layer_params:
        h = _ref_mamba(h, p, d_state, d_conv, dt_rank)
    return jnp.sum(h, axis=-1)


# ----------------------------------------------------------------------------
if __name__ == "__main__":
    B, C_in, L = 2, 4, 16
    d_model, d_state, d_conv, expand, num_layers = 32, 8, 4, 2, 2
    d_inner = expand * d_model
    dt_rank = math.ceil(d_model / 16)

    keys = iter(jax.random.split(jax.random.PRNGKey(0), 64))

    def rnd(shape, scale):
        return jax.random.normal(next(keys), shape, jnp.float32) * scale

    # embedding params (Conv1d weight stored as (k, C_in, D); BN at torch init)
    emb_params = (
        rnd((3, C_in, d_model), 1.0 / math.sqrt(3 * C_in)),   # conv weight
        jnp.ones((1, d_model), jnp.float32),                  # BN gamma
        jnp.zeros((1, d_model), jnp.float32),                 # BN beta
        jnp.zeros((1, d_model), jnp.float32),                 # running mean
        jnp.ones((1, d_model), jnp.float32),                  # running var
    )

    layer_params = []
    for _ in range(num_layers):
        layer_params.append(dict(
            w_in=rnd((d_model, 2 * d_inner), 1.0 / math.sqrt(d_model)),
            conv_w=rnd((d_conv, d_inner), 1.0 / math.sqrt(d_conv)),
            conv_b=rnd((1, d_inner), 0.02),
            w_x=rnd((d_inner, dt_rank + 2 * d_state), 1.0 / math.sqrt(d_inner)),
            w_dt=rnd((dt_rank, d_inner), 1.0 / math.sqrt(dt_rank)),
            b_dt=rnd((1, d_inner), 0.02),
            a_log=jnp.log(jnp.broadcast_to(
                jnp.arange(1, d_state + 1, dtype=jnp.float32),
                (d_inner, d_state))),
            d=jnp.ones((1, d_inner), jnp.float32),
            w_out=rnd((d_inner, d_model), 1.0 / math.sqrt(d_inner)),
        ))

    x = jax.random.normal(next(keys), (B, C_in, L), jnp.float32)
    y = jax.random.normal(next(keys), (B, L), jnp.float32)  # unused by forward

    out = mamba_seq2seq_forward(x, y, emb_params, layer_params,
                                d_state=d_state, d_conv=d_conv,
                                dt_rank=dt_rank)
    out = jax.block_until_ready(out)

    ref = _ref_forward(x, emb_params, layer_params, d_state, d_conv, dt_rank)
    err = float(jnp.max(jnp.abs(out - ref)))
    tol = 5e-2 * max(1.0, float(jnp.max(jnp.abs(ref))))
    assert out.shape == (B, L), out.shape
    assert bool(jnp.all(jnp.isfinite(out)))
    assert err < tol, f"max abs err {err} exceeds tol {tol}"
    print("KERNEL_OK")
</pallas_src>

<mosaic_0001>
module attributes {stable_mosaic.version = 11 : i64} {
  func.func @kern(%arg0: i32, %arg1: i32, %arg2: memref<32x12xf32, #tpu.memory_space<vmem>>, %arg3: memref<12x32xbf16, #tpu.memory_space<vmem>>, %arg4: memref<1x32xf32, #tpu.memory_space<vmem>>, %arg5: memref<32x32xf32, #tpu.memory_space<vmem>>) attributes {dimension_semantics = [#tpu.dimension_semantics<parallel>, #tpu.dimension_semantics<parallel>], iteration_bounds = array<i64: 1, 1>, scalar_prefetch = 0 : i64, scratch_operands = 0 : i64, tpu.core_type = #tpu.core_type<tc>, window_params = [{transform_indices = @transform_0, window_bounds = array<i64: 32, 12>}, {transform_indices = @transform_1, window_bounds = array<i64: 12, 32>}, {transform_indices = @transform_2, window_bounds = array<i64: 1, 32>}, {transform_indices = @transform_3, window_bounds = array<i64: 32, 32>}]} {
    %c0 = arith.constant 0 : index
    %c0_0 = arith.constant 0 : index
    %0 = vector.load %arg2[%c0, %c0_0] : memref<32x12xf32, #tpu.memory_space<vmem>>, vector<32x12xf32>
    %1 = arith.truncf %0 : vector<32x12xf32> to vector<32x12xbf16>
    %c0_1 = arith.constant 0 : index
    %c0_2 = arith.constant 0 : index
    %2 = vector.load %arg3[%c0_1, %c0_2] : memref<12x32xbf16, #tpu.memory_space<vmem>>, vector<12x32xbf16>
    %cst = arith.constant dense<0.000000e+00> : vector<32x32xf32>
    %3 = tpu.matmul %1, %2, %cst {dimension_numbers = #tpu.dot_dimension_numbers<[1], [0], [0], [1], [0, 0, 1, 1], [], []>} : vector<32x12xbf16>, vector<12x32xbf16>, vector<32x32xf32> -> vector<32x32xf32>
    %c0_3 = arith.constant 0 : index
    %c0_4 = arith.constant 0 : index
    %4 = vector.load %arg4[%c0_3, %c0_4] : memref<1x32xf32, #tpu.memory_space<vmem>>, vector<1x32xf32>
    %5 = vector.broadcast %4 : vector<1x32xf32> to vector<32x32xf32>
    %6 = arith.addf %3, %5 : vector<32x32xf32>
    %7 = math.absf %6 : vector<32x32xf32>
    %cst_5 = arith.constant 0.000000e+00 : f32
    %8 = vector.broadcast %cst_5 : f32 to vector<32x32xf32>
    %9 = arith.subf %8, %7 : vector<32x32xf32>
    %10 = math.exp %9 : vector<32x32xf32>
    %cst_6 = arith.constant 0.000000e+00 : f32
    %11 = vector.broadcast %cst_6 : f32 to vector<32x32xf32>
    %12 = arith.cmpf oge, %6, %11 : vector<32x32xf32>
    %cst_7 = arith.constant 1.000000e+00 : f32
    %13 = vector.broadcast %cst_7 : f32 to vector<32x32xf32>
    %14 = arith.addf %13, %10 : vector<32x32xf32>
    %cst_8 = arith.constant 1.000000e+00 : f32
    %15 = vector.broadcast %cst_8 : f32 to vector<32x32xf32>
    %16 = arith.divf %15, %14 : vector<32x32xf32>
    %cst_9 = arith.constant 1.000000e+00 : f32
    %17 = vector.broadcast %cst_9 : f32 to vector<32x32xf32>
    %18 = arith.addf %17, %10 : vector<32x32xf32>
    %19 = arith.divf %10, %18 : vector<32x32xf32>
    %20 = arith.select %12, %16, %19 : vector<32x32xi1>, vector<32x32xf32>
    %21 = arith.mulf %6, %20 : vector<32x32xf32>
    %c0_10 = arith.constant 0 : index
    %c0_11 = arith.constant 0 : index
    %22 = vector.load %arg5[%c0_10, %c0_11] : memref<32x32xf32, #tpu.memory_space<vmem>>, vector<32x32xf32>
    tpu.vector_store %arg5[%c0_10, %c0_11], %21 {strides = array<i32>} : memref<32x32xf32, #tpu.memory_space<vmem>>, vector<32x32xf32>,
    return
  }
  func.func @transform_0(%arg0: i32, %arg1: i32) -> (i32, i32) {
    %c0_i32 = arith.constant 0 : i32
    %c0_i32_0 = arith.constant 0 : i32
    return %arg0, %c0_i32 : i32, i32
  }
  func.func @transform_1(%arg0: i32, %arg1: i32) -> (i32, i32) {
    %c0_i32 = arith.constant 0 : i32
    %c0_i32_0 = arith.constant 0 : i32
    return %c0_i32, %arg1 : i32, i32
  }
  func.func @transform_2(%arg0: i32, %arg1: i32) -> (i32, i32) {
    %c0_i32 = arith.constant 0 : i32
    %c0_i32_0 = arith.constant 0 : i32
    return %c0_i32, %arg1 : i32, i32
  }
  func.func @transform_3(%arg0: i32, %arg1: i32) -> (i32, i32) {
    %c0_i32 = arith.constant 0 : i32
    return %arg0, %arg1 : i32, i32
  }
}

</mosaic_0001>

<bundles_post_ra>
// kernel: tpu_custom_call.1
= control target key start
LH: loop header
LB: loop body
LE: loop exit
PB: predicated region body
PF: predicated region fallthrough
CT: control target
= control target key end

     0   :  { %vm40_vm0 = vcmask 1045504   ;;  %s329_s0 = inlined_call_operand.vmem [shape: f32[32,12], index: 0, kind: input, shape index: {}]   ;;  %s330_s1 = inlined_call_operand.vmem [shape: bf16[12,32], index: 1, kind: input, shape index: {}]   ;;  %s331_s2 = inlined_call_operand.vmem [shape: f32[1,32], index: 2, kind: input, shape index: {}]   ;;  %s332_s3 = inlined_call_operand.hbm [shape: f32[32,32], index: 3, kind: output, shape index: {}]  }
   0x1   :  { %v184_v0 = vld [vmem:[%s330_s1] sm:$0xf]  ;;  %v188_v1 = vld [vmem:[%s330_s1] sm:$0x30]  ;;  %v17_v4 = vld [vmem:[%s329_s0 + $0x8] sm:$0xff] }
   0x2   :  { %v16_v2 = vld [vmem:[%s329_s0] sm:$0xff]  ;;  %v185_v3 = vor.u32 %v188_v1, %v184_v0  ;;  %v18_v5 = vld [vmem:[%s329_s0 + $0x10] sm:$0xff]  ;;  %v19_v6 = vld [vmem:[%s329_s0 + $0x18] sm:$0xff] }
   0x3   :  { %8 = vsyncpa [#allocation3], 0  ;;  %v20_v8 = vpack.c.bf16 %v17_v4, %v16_v2  ;;  %v21_v9 = vpack.c.bf16 %v19_v6, %v18_v5  ;;  %vm33_vm1 = vcmask 97280   ;;  %v193_v10 = vld [vmem:[%s331_s2] ss:$0 sm:$0xff]  ;;  %vm159_vm12 = vcmask 261120  }
   0x4   :  { %v42_v7 = vsel %vm40_vm0, %v185_v3, 0  ;;  %s236_s0 = smov [#allocation2]   ;;  %s170_s27 = sshll.u32 %s332_s3, 4  ;;  %s171_s27 = int_to_ptr.hbm [resolvable:$true] %s170_s27 }
   0x5   :  { %51 = vmatpush.bf16.msra.mxu0 %v42_v7  ;;  %189 = vmatpush.bf16.msra.mxu1 %v42_v7  ;;  %s168_s2 = sshll.u32 %s236_s0, 4  ;;  %s237_s28 = smov 128   ;;  %s169_s2 = int_to_ptr.vmem [resolvable:$true] %s168_s2 }
   0x6   :  { %s238_s29 = smov 8  }
   0x8   :  { %186 = vmatmul.msk.bf16.vlgmr.msra.gmra.mxu0 %vm33_vm1, %v20_v8  ;;  %187 = vmatmul.msk.bf16.vlgmr.msra.gmra.mxu1 %vm33_vm1, %v21_v9 }
  0x85   :  { %v53_v11 = vpop.f32.mrf.mxu0  ;;  %v58_v12 = vpop.f32.mrf.mxu1 }
  0x86   :  { %v280_v13 = vadd.f32 %v193_v10, %v53_v11  ;;  %v282_v14 = vadd.f32 %v193_v10, %v58_v12 }
  0x88   :  { %v63_v15 = vand.u32 2147483647, %v280_v13  ;;  %v65_v16 = vand.u32 2147483647, %v282_v14  ;;  %vm79_vm9 = vcmp.ge.f32.partialorder %v280_v13, 0.0  ;;  %vm81_vm11 = vcmp.ge.f32.partialorder %v282_v14, 0.0 }
  0x8a   :  { %v67_v17 = vsub.f32 0.0, %v63_v15  ;;  %v69_v18 = vsub.f32 0.0, %v65_v16 }
  0x8c   :  { %v71_v19 = vmul.f32 1.442695, %v67_v17  ;;  %v75_v20 = vmul.f32 1.442695, %v69_v18 }
  0x8d   :  { %v55_v21 = vpop.f32.mrf.mxu0  ;;  %v60_v22 = vpop.f32.mrf.mxu1 }
  0x8e   :  { %194 = vpow2.f32 %v71_v19  ;;  %v286_v23 = vadd.f32 %v193_v10, %v55_v21  ;;  %v288_v24 = vadd.f32 %v193_v10, %v60_v22 }
  0x8f   :  { %196 = vpow2.f32 %v75_v20 }
  0x90   :  { %v64_v25 = vand.u32 2147483647, %v286_v23  ;;  %v66_v26 = vand.u32 2147483647, %v288_v24 }
  0x92   :  { %v68_v27 = vsub.f32 0.0, %v64_v25  ;;  %v70_v28 = vsub.f32 0.0, %v66_v26 }
  0x94   :  { %v195_v29 = vpop.eup %194  ;;  %v73_v30 = vmul.f32 1.442695, %v68_v27  ;;  %v77_v33 = vmul.f32 1.442695, %v70_v28 }
  0x95   :  { %v197_v31 = vpop.eup %196  ;;  %v83_v32 = vadd.f32 1.0, %v195_v29 }
  0x96   :  { %v85_v34 = vadd.f32 1.0, %v197_v31  ;;  %198 = vpow2.f32 %v73_v30 }
  0x97   :  { %200 = vrcp.f32 %v83_v32  ;;  %v96_v44 = vand.u32 2147483647, %v83_v32  ;;  %v98_v45 = vand.u32 2147483648, %v83_v32  ;;  %vm92_vm4 = vweird.f32 %v83_v32 }
  0x98   :  { %202 = vrcp.f32 %v85_v34  ;;  %v128_v48 = vand.u32 2147483648, %v85_v34  ;;  %v126_v50 = vand.u32 2147483647, %v85_v34  ;;  %vm122_vm6 = vweird.f32 %v85_v34 }
  0x99   :  { %204 = vpow2.f32 %v77_v33  ;;  %v99_v53 = vor.u32 1.1754944e-38, %v98_v45  ;;  %vm97_vm7 = vcmp.eq.f32.partialorder %v96_v44, 8.507059e+37 }
  0x9a   :  { %v129_v56 = vor.u32 1.1754944e-38, %v128_v48  ;;  %vm127_vm10 = vcmp.eq.f32.partialorder %v126_v50, 8.507059e+37 }
  0x9c   :  { %v292_v35 = vpop.eup %198 }
  0x9d   :  { %v201_v36 = vpop.eup %200  ;;  %v295_v37 = vadd.f32 1.0, %v292_v35 }
  0x9e   :  { %v203_v38 = vpop.eup %202  ;;  %v88_v39 = vmul.f32 %v201_v36, %v83_v32  ;;  %vm93_vm2 = vweird.f32 %v201_v36 }
  0x9f   :  { %v297_v40 = vpop.eup %204  ;;  %v118_v41 = vmul.f32 %v203_v38, %v85_v34  ;;  %206 = vrcp.f32 %v295_v37  ;;  %vm123_vm3 = vweird.f32 %v203_v38  ;;  %vm94_vm5 = vmor %vm92_vm4, %vm93_vm2  ;;  %v113_v1 = vand.u32 2147483648, %v295_v37 }
  0xa0   :  { %v89_v42 = vsub.f32 1.0, %v88_v39  ;;  %v301_v43 = vadd.f32 1.0, %v297_v40  ;;  %vm124_vm8 = vmor %vm122_vm6, %vm123_vm3  ;;  %v111_v5 = vand.u32 2147483647, %v295_v37  ;;  %vm107_vm14 = vweird.f32 %v295_v37 }
  0xa1   :  { %v119_v46 = vsub.f32 1.0, %v118_v41  ;;  %v114_v12 = vor.u32 1.1754944e-38, %v113_v1  ;;  %vm80_vm4 = vcmp.ge.f32.partialorder %v286_v23, 0.0  ;;  %vm82_vm6 = vcmp.ge.f32.partialorder %v288_v24, 0.0 }
  0xa2   :  { %v90_v47 = vmul.f32 %v201_v36, %v89_v42  ;;  %208 = vrcp.f32 %v301_v43  ;;  %v143_v11 = vand.u32 2147483648, %v301_v43  ;;  %v141_v16 = vand.u32 2147483647, %v301_v43 }
  0xa3   :  { %v120_v49 = vmul.f32 %v203_v38, %v119_v46  ;;  %vm112_vm1 = vcmp.eq.f32.partialorder %v111_v5, 8.507059e+37  ;;  %vm137_vm2 = vweird.f32 %v301_v43 }
  0xa4   :  { %v91_v51 = vadd.f32 %v201_v36, %v90_v47  ;;  %v144_v19 = vor.u32 1.1754944e-38, %v143_v11 }
  0xa5   :  { %v207_v52 = vpop.eup %206  ;;  %v121_v54 = vadd.f32 %v203_v38, %v120_v49 }
  0xa6   :  { %v95_v55 = vsel %vm94_vm5, %v201_v36, %v91_v51  ;;  %v103_v57 = vmul.f32 %v207_v52, %v295_v37  ;;  %vm108_vm13 = vweird.f32 %v207_v52  ;;  %vm142_vm5 = vcmp.eq.f32.partialorder %v141_v16, 8.507059e+37 }
  0xa7   :  { %v100_v58 = vsel %vm97_vm7, %v99_v53, %v95_v55  ;;  %v125_v59 = vsel %vm124_vm8, %v203_v38, %v121_v54  ;;  %vm109_vm15 = vmor %vm107_vm14, %vm108_vm13 }
  0xa8   :  { %v209_v60 = vpop.eup %208  ;;  %v147_v61 = vmul.f32 %v195_v29, %v100_v58  ;;  %v130_v62 = vsel %vm127_vm10, %v129_v56, %v125_v59  ;;  %v104_v63 = vsub.f32 1.0, %v103_v57 }
  0xa9   :  { %v149_v0 = vmul.f32 %v197_v31, %v130_v62  ;;  %v133_v2 = vmul.f32 %v209_v60, %v301_v43  ;;  %vm138_vm0 = vweird.f32 %v209_v60 }
  0xaa   :  { %v151_v3 = vsel %vm79_vm9, %v100_v58, %v147_v61  ;;  %v105_v4 = vmul.f32 %v207_v52, %v104_v63  ;;  %vm139_vm3 = vmor %vm137_vm2, %vm138_vm0 }
  0xab   :  { %v155_v6 = vmul.f32 %v151_v3, %v280_v13  ;;  %v153_v7 = vsel %vm81_vm11, %v130_v62, %v149_v0  ;;  %v134_v8 = vsub.f32 1.0, %v133_v2 }
  0xac   :  { %v157_v9 = vmul.f32 %v153_v7, %v282_v14  ;;  %v106_v10 = vadd.f32 %v207_v52, %v105_v4 }
  0xad   :  { %160 = vst.msk [vmem:[#allocation2] sm:$0xff] %vm159_vm12, %v155_v6  ;;  %v135_v15 = vmul.f32 %v209_v60, %v134_v8 }
  0xae   :  { %162 = vst.msk [vmem:[#allocation2 + $0x10] sm:$0xff] %vm159_vm12, %v157_v9  ;;  %v110_v13 = vsel %vm109_vm15, %v207_v52, %v106_v10 }
  0xaf   :  { %v115_v17 = vsel %vm112_vm1, %v114_v12, %v110_v13  ;;  %v136_v18 = vadd.f32 %v209_v60, %v135_v15 }
  0xb0   :  { %v148_v14 = vmul.f32 %v292_v35, %v115_v17 }
  0xb1   :  { %v140_v20 = vsel %vm139_vm3, %v209_v60, %v136_v18 }
  0xb2   :  { %v152_v21 = vsel %vm80_vm4, %v115_v17, %v148_v14  ;;  %v145_v22 = vsel %vm142_vm5, %v144_v19, %v140_v20 }
  0xb3   :  { %v156_v25 = vmul.f32 %v152_v21, %v286_v23  ;;  %v150_v26 = vmul.f32 %v297_v40, %v145_v22 }
  0xb5   :  { %161 = vst.msk [vmem:[#allocation2 + $0x8] sm:$0xff] %vm159_vm12, %v156_v25  ;;  %v154_v27 = vsel %vm82_vm6, %v145_v22, %v150_v26 }
  0xb6   :  { %v158_v28 = vmul.f32 %v154_v27, %v288_v24 }
  0xb8   :  { %163 = vst.msk [vmem:[#allocation2 + $0x18] sm:$0xff] %vm159_vm12, %v158_v28 }
  0xb9   :  { %176 = dma.vmem_to_hbm [thread:$0]  %s169_s2, 512, %s171_s27, [#allocation3], %s237_s28, %s237_s28, %s238_s29  }
  0xba   :  { %234 = dma.done.wait [#allocation3], 512  }
  0xbb   :  { %235 = vsyncadd [#allocation3], 4294966784 }
  0xbc   :  { %181 = vsyncpa [#allocation3], 1 }

</bundles_post_ra>
